<compile_context>
chip_gen: v5e
topology: v5e:2x2
jax: 0.10.0
libtpu: 0.0.40
codegen_flags: <defaults>
</compile_context>

<pallas_src>
import functools
import math

import jax
import jax.numpy as jnp
from jax.experimental import pallas as pl
from jax.experimental.pallas import tpu as pltpu


# -----------------------------------------------------------------------------
# Pallas kernel: one batch-tile.
#   x_ref  : (TB, D, G)  de-interleaved input, D = in_channels * kernel_size
#   wt_ref : (O, D)      averaged weights, pre-transposed (resident across grid)
#   b_ref  : (O, 1)      bias column (resident)
#   o_ref  : (TB, O, G)  output in final layout -> zero post-kernel epilogue
# -----------------------------------------------------------------------------
def _sal_kernel(x_ref, wt_ref, b_ref, o_ref, *, tb):
    w = wt_ref[...]
    bias = b_ref[...]
    for t in range(tb):  # static unroll; tb is small
        acc = jnp.dot(w, x_ref[t], preferred_element_type=jnp.float32)  # (O, G)
        o_ref[t] = (acc + bias).astype(o_ref.dtype)


# -----------------------------------------------------------------------------
# Parameter init / prep (hoisted out of the per-forward path).
# -----------------------------------------------------------------------------
def init_structure_aware_params(key, out_channels, kernel_size=1,
                                num_rows=6, num_cols=420, dtype=jnp.float32):
    """Deterministic re-implementation of reset_parameters() (same bounds, JAX RNG)."""
    kw, kb = jax.random.split(key)
    # kaiming_uniform_(a=sqrt(5)) on (num_rows, num_cols, O, K):
    #   fan_in = num_cols * O * K, gain = sqrt(2/(1+5)) -> bound = 1/sqrt(fan_in)
    fan_in = num_cols * out_channels * kernel_size
    w_bound = math.sqrt(1.0 / fan_in)
    b_bound = 1.0 / math.sqrt(fan_in)
    weights = jax.random.uniform(
        kw, (num_rows, num_cols, out_channels, kernel_size),
        minval=-w_bound, maxval=w_bound, dtype=dtype)
    biases = jax.random.uniform(
        kb, (out_channels,), minval=-b_bound, maxval=b_bound, dtype=dtype)
    return weights, biases


def _average_weights(weights, num_rows, num_cols):
    """weights.unfold(0,nr,nr).unfold(1,nc,nc).mean((0,1)).flatten(1).T -> (D, O).

    Matches the torch flatten order exactly: D index = k*nr*nc + a*nc + b.
    """
    R, C, O, K = weights.shape
    nR, nC = R // num_rows, C // num_cols
    # torch.unfold(step=size) silently drops the remainder rows/cols - do the same.
    w = weights[: nR * num_rows, : nC * num_cols]
    w = w.reshape(nR, num_rows, nC, num_cols, O, K).mean(axis=(0, 2))  # (nr, nc, O, K)
    w = jnp.transpose(w, (2, 3, 0, 1))                                 # (O, K, nr, nc)
    w = w.reshape(O, K * num_rows * num_cols)                          # d = k*nr*nc + a*nc + b
    return jnp.transpose(w, (1, 0))                                    # (D, O)


def prepare_structure_aware_params(weights, biases, num_rows=3, num_cols=3):
    """Hoisted weight prep: call once per weight update, NOT once per forward.

    Returns (w_t, b_col, D, O) where w_t is (O, D) so the kernel does a plain
    (O, D) @ (D, G) matmul and bias broadcasts along lanes as an (O, 1) column.
    Tiny weights stay unpadded: full-extent blocks satisfy the (8,128) rule and
    padding D would only inflate traffic on this mem-bound kernel.
    """
    w2d = _average_weights(weights, num_rows, num_cols)  # (D, O)
    D, O = w2d.shape
    w_t = jnp.transpose(w2d, (1, 0))                     # (O, D)
    b_col = biases.reshape(O, 1)
    return w_t, b_col, D, O


# -----------------------------------------------------------------------------
# Forward pass.
# -----------------------------------------------------------------------------
def structure_aware_forward(x, w_t, b_col, out_channels, kernel_size, *, block_b=8):
    batch, in_ch, in_dim = x.shape
    K = kernel_size
    assert in_dim % K == 0, "in_dim must be divisible by kernel_size"
    G = in_dim // K
    D = in_ch * K
    O, Dw = w_t.shape
    assert D == Dw, (
        "in_channels * kernel_size must equal kernel_size * num_rows * num_cols")
    assert O == out_channels

    if K == 1:
        x_t = x                                           # (B, D, G): zero input glue
    else:
        # One XLA relayout: x[b, c, g*K+k] -> x_t[b, c*K+k, g]  (same flat-D order
        # as the torch .view/.transpose/.flatten chain, contracted positionally
        # against the k-major weight flatten, exactly like the torch einsum).
        # TODO(synk): fold this de-interleave into the kernel with K lane-strided
        # pl.ds reads to drop this extra HBM round trip of x.
        x_t = jnp.swapaxes(x.reshape(batch, in_ch, G, K), -1, -2).reshape(batch, D, G)

    # Batch tile: leading (untiled-layout) dim, so no (8,128) constraint on it.
    tb = max(1, min(block_b, batch))
    if batch >= 2:
        tb = min(tb, pl.cdiv(batch, 2))   # >= 2 grid steps -> both v7x TCs get work
    grid = (pl.cdiv(batch, tb),)

    itemsize = jnp.dtype(x.dtype).itemsize
    cost = pl.CostEstimate(
        flops=2 * batch * G * D * O,
        transcendentals=0,
        bytes_accessed=int((x_t.size + w_t.size + b_col.size + batch * O * G) * itemsize),
    )

    return pl.pallas_call(
        functools.partial(_sal_kernel, tb=tb),
        out_shape=jax.ShapeDtypeStruct((batch, O, G), x.dtype),
        grid=grid,
        in_specs=[
            pl.BlockSpec((tb, D, G), lambda i: (i, 0, 0)),   # batch tile, pipelined
            pl.BlockSpec((O, D), lambda i: (0, 0)),          # weights, resident
            pl.BlockSpec((O, 1), lambda i: (0, 0)),          # bias column, resident
        ],
        out_specs=pl.BlockSpec((tb, O, G), lambda i: (i, 0, 0)),
        compiler_params=pltpu.CompilerParams(
            dimension_semantics=("parallel",)),               # megacore-shardable
        cost_estimate=cost,
    )(x_t, w_t, b_col)


# -----------------------------------------------------------------------------
# Pure-JAX reference mirroring the PyTorch forward, for verification.
# -----------------------------------------------------------------------------
def _reference_forward(x, weights, biases, kernel_size, num_rows=3, num_cols=3):
    O = weights.shape[2]
    w2d = _average_weights(weights, num_rows, num_cols)      # (D, O)
    batch, in_ch, in_dim = x.shape
    G = in_dim // kernel_size
    xg = x.reshape(batch, in_ch, G, kernel_size)
    xg = jnp.transpose(xg, (0, 2, 1, 3)).reshape(batch * G, in_ch * kernel_size)
    out = jnp.einsum('bd,dc->bc', xg, w2d,
                     precision=jax.lax.Precision.HIGHEST) + biases
    out = out.reshape(batch, G, O)
    return jnp.transpose(out, (0, 2, 1))                      # (batch, O, G)


if __name__ == "__main__":
    key = jax.random.PRNGKey(0)
    k_param, k_x = jax.random.split(key)

    # Module config (small, consistent with forward()'s constraints).
    out_channels = 32
    kernel_size = 2
    param_rows, param_cols = 6, 420      # parameter grid (module defaults)
    fwd_rows, fwd_cols = 3, 3            # forward() window sizes (defaults)
    # forward requires in_channels == fwd_rows * fwd_cols -> 9
    batch, in_channels, in_dim = 2, 9, 16

    weights, biases = init_structure_aware_params(
        k_param, out_channels, kernel_size, param_rows, param_cols)
    x = jax.random.normal(k_x, (batch, in_channels, in_dim), dtype=jnp.float32)

    # Weight prep is hoisted: computed once, reused across forwards.
    w_t, b_col, d_logical, o_logical = prepare_structure_aware_params(
        weights, biases, fwd_rows, fwd_cols)

    fwd = jax.jit(structure_aware_forward, static_argnums=(3, 4))
    out = fwd(x, w_t, b_col, out_channels, kernel_size)
    out = jax.block_until_ready(out)

    ref = _reference_forward(x, weights, biases, kernel_size, fwd_rows, fwd_cols)
    assert out.shape == (batch, out_channels, in_dim // kernel_size), out.shape
    assert jnp.allclose(out, ref, atol=1e-5, rtol=1e-5), \
        float(jnp.max(jnp.abs(out - ref)))

    print("KERNEL_OK")
</pallas_src>

<mosaic_0001>
module attributes {stable_mosaic.version = 11 : i64} {
  func.func @_sal_kernel(%arg0: i32, %arg1: memref<1x18x8xf32, #tpu.memory_space<vmem>>, %arg2: memref<32x18xf32, #tpu.memory_space<vmem>>, %arg3: memref<32x1xf32, #tpu.memory_space<vmem>>, %arg4: memref<1x32x8xf32, #tpu.memory_space<vmem>>) attributes {dimension_semantics = [#tpu.dimension_semantics<parallel>], iteration_bounds = array<i64: 2>, scalar_prefetch = 0 : i64, scratch_operands = 0 : i64, tpu.core_type = #tpu.core_type<tc>, window_params = [{transform_indices = @transform_0, window_bounds = array<i64: 1, 18, 8>}, {pipeline_mode = #tpu.pipeline_mode<synchronous>, transform_indices = @transform_1, window_bounds = array<i64: 32, 18>}, {pipeline_mode = #tpu.pipeline_mode<synchronous>, transform_indices = @transform_2, window_bounds = array<i64: 32, 1>}, {transform_indices = @transform_3, window_bounds = array<i64: 1, 32, 8>}]} {
    %c0 = arith.constant 0 : index
    %c0_0 = arith.constant 0 : index
    %0 = vector.load %arg2[%c0, %c0_0] : memref<32x18xf32, #tpu.memory_space<vmem>>, vector<32x18xf32>
    %c0_1 = arith.constant 0 : index
    %c0_2 = arith.constant 0 : index
    %1 = vector.load %arg3[%c0_1, %c0_2] : memref<32x1xf32, #tpu.memory_space<vmem>>, vector<32x1xf32>
    %c0_3 = arith.constant 0 : index
    %c0_4 = arith.constant 0 : index
    %c0_5 = arith.constant 0 : index
    %2 = vector.load %arg1[%c0_3, %c0_4, %c0_5] : memref<1x18x8xf32, #tpu.memory_space<vmem>>, vector<1x18x8xf32>
    %3 = vector.shape_cast %2 : vector<1x18x8xf32> to vector<18x8xf32>
    %cst = arith.constant dense<0.000000e+00> : vector<32x8xf32>
    %4 = tpu.matmul %0, %3, %cst {dimension_numbers = #tpu.dot_dimension_numbers<[1], [0], [0], [1], [0, 0, 1, 1], [], []>} : vector<32x18xf32>, vector<18x8xf32>, vector<32x8xf32> -> vector<32x8xf32>
    %5 = vector.broadcast %1 : vector<32x1xf32> to vector<32x8xf32>
    %6 = arith.addf %4, %5 : vector<32x8xf32>
    %c0_6 = arith.constant 0 : index
    %c0_7 = arith.constant 0 : index
    %c0_8 = arith.constant 0 : index
    %7 = vector.load %arg4[%c0_6, %c0_7, %c0_8] : memref<1x32x8xf32, #tpu.memory_space<vmem>>, vector<1x32x8xf32>
    %8 = vector.shape_cast %7 : vector<1x32x8xf32> to vector<32x8xf32>
    %9 = vector.shape_cast %6 : vector<32x8xf32> to vector<1x32x8xf32>
    tpu.vector_store %arg4[%c0_6, %c0_7, %c0_8], %9 {strides = array<i32>} : memref<1x32x8xf32, #tpu.memory_space<vmem>>, vector<1x32x8xf32>,
    return
  }
  func.func @transform_0(%arg0: i32) -> (i32, i32, i32) {
    %c0_i32 = arith.constant 0 : i32
    %c0_i32_0 = arith.constant 0 : i32
    %c0_i32_1 = arith.constant 0 : i32
    return %arg0, %c0_i32, %c0_i32_0 : i32, i32, i32
  }
  func.func @transform_1(%arg0: i32) -> (i32, i32) {
    %c0_i32 = arith.constant 0 : i32
    %c0_i32_0 = arith.constant 0 : i32
    %c0_i32_1 = arith.constant 0 : i32
    return %c0_i32, %c0_i32_0 : i32, i32
  }
  func.func @transform_2(%arg0: i32) -> (i32, i32) {
    %c0_i32 = arith.constant 0 : i32
    %c0_i32_0 = arith.constant 0 : i32
    %c0_i32_1 = arith.constant 0 : i32
    return %c0_i32, %c0_i32_0 : i32, i32
  }
  func.func @transform_3(%arg0: i32) -> (i32, i32, i32) {
    %c0_i32 = arith.constant 0 : i32
    %c0_i32_0 = arith.constant 0 : i32
    %c0_i32_1 = arith.constant 0 : i32
    return %arg0, %c0_i32, %c0_i32_0 : i32, i32, i32
  }
}

</mosaic_0001>

<bundles_post_ra>
// kernel: structure_aware_forward.1
= control target key start
LH: loop header
LB: loop body
LE: loop exit
PB: predicated region body
PF: predicated region fallthrough
CT: control target
= control target key end

     0   :  { %s374_s12 = smov 0   ;;  %s419_s0 = inlined_call_operand.vmem [shape: f32[2,18,8], index: 0, kind: input, shape index: {}]   ;;  %s420_s1 = inlined_call_operand.vmem [shape: f32[32,18], index: 1, kind: input, shape index: {}]   ;;  %s421_s2 = inlined_call_operand.vmem [shape: f32[32,1], index: 2, kind: input, shape index: {}]   ;;  %s422_s3 = inlined_call_operand.vmem [shape: f32[2,32,8], index: 3, kind: output, shape index: {}]  }
   0x1 LB: > { %s308_s13 = sadd.s32 4294967295, %s351_s12   ;;  %p312_p0 = scmp.ge.s32.totalorder %s351_s12, 1  ;;  %s351_s12 = sphi %s374_s12, %s13_s12  }
   0x2   : > { %p137_p1 = scmp.lt.s32.totalorder %s351_s12, 3 }
   0x4   : > { %p138_p2 = pnand %p312_p0, %p137_p1 }
   0x5   : > { %p161_p3 = scmp.lt.s32.totalorder (!%p138_p2), %s308_s13, 1 }
   0x6   : > { %141 = sbr.rel (%p138_p2) target bundleno = 159 (0x9f), region = 32 }
   0xb   : > { %v353_v0 = vmov 0   ;;  %v177_v1 = vld [vmem:[%s421_s2 + $0x10] sm:$0xff]  ;;  %s424_s13 = smov (!%p161_p3, %s308_s13), 1  ;;  %v175_v2 = vld [vmem:[%s421_s2] sm:$0xff]  ;;  %vm215_vm0 = vcmask 1041408   ;;  %vm202_vm1 = vcmask 146432  }
   0xc   : > { %344 = vset.pattern.permute.xlu1 %v353_v0  ;;  %343 = vset.pattern.permute.xlu0 %v353_v0  ;;  %s333_s18 = smul.u32 24, %s424_s13  ;;  %v171_v6 = vld [vmem:[%s420_s1] sm:$0xff]  ;;  %v172_v7 = vld [vmem:[%s420_s1 + $0x8] sm:$0xff]  ;;  %v173_v8 = vld [vmem:[%s420_s1 + $0x10] sm:$0xff]  ;;  %s323_s7 = sshll.u32 %s424_s13, 5  ;;  %vm248_vm2 = vcmask 64512  }
   0xd   : > { %194 = vperm.xlu1 %344, %v177_v1   ;;  %184 = vperm.xlu0 %343, %v175_v2   ;;  %v174_v9 = vld [vmem:[%s420_s1 + $0x18] sm:$0xff]  ;;  %v176_v11 = vld [vmem:[%s421_s2 + $0x8] sm:$0xff]  ;;  %s170_s10 = scalar_lea.vmem %s422_s3, %s323_s7 }
   0xe   : > { %s165_s21 = scalar_lea.vmem %s419_s0, %s333_s18  ;;  %v178_v10 = vld [vmem:[%s421_s2 + $0x18] sm:$0xff] }
   0xf   : > { %v181_v3 = vld [vmem:[%s165_s21 + $0x10] sm:$0x3]  ;;  %v180_v4 = vld [vmem:[%s165_s21 + $0x8] sm:$0xff]  ;;  %v179_v5 = vld [vmem:[%s165_s21] sm:$0xff] }
  0x10   : > { %316 = vmatpush.msk.msra.mxu0 %vm215_vm0, %v181_v3  ;;  %324 = vmatpush.msk.msra.mxu1 %vm215_vm0, %v181_v3 }
  0x11   : > { %325 = vmatpush.msk.msra.mxu2 %vm215_vm0, %v181_v3  ;;  %326 = vmatpush.msk.msra.mxu3 %vm215_vm0, %v181_v3 }
  0x12   : > { %233 = vmatpush.msra.mxu0 %v180_v4  ;;  %327 = vmatpush.msra.mxu1 %v180_v4 }
  0x13   : > { %328 = vmatpush.msra.mxu2 %v180_v4  ;;  %329 = vmatpush.msra.mxu3 %v180_v4 }
  0x14   : > { %234 = vmatpush.msra.mxu0 %v179_v5  ;;  %330 = vmatpush.msra.mxu1 %v179_v5 }
  0x15   : > { %331 = vmatpush.msra.mxu2 %v179_v5  ;;  %332 = vmatpush.msra.mxu3 %v179_v5 }
  0x16   : > { %317 = vmatmul.msk.f32.vlgmr.msra.gmra.mxu0 %vm202_vm1, %v171_v6  ;;  %318 = vmatmul.msk.f32.vlgmr.msra.gmra.mxu1 %vm202_vm1, %v172_v7 }
  0x17   : > { %319 = vmatmul.msk.f32.vlgmr.msra.gmra.mxu2 %vm202_vm1, %v173_v8  ;;  %320 = vmatmul.msk.f32.vlgmr.msra.gmra.mxu3 %vm202_vm1, %v174_v9 }
  0x18   : > { %199 = vperm.xlu1 %344, %v178_v10   ;;  %189 = vperm.xlu0 %343, %v176_v11  }
  0x7f   : > { %v185_v12 = vpop.permute.xlu0 %184  ;;  %v195_v13 = vpop.permute.xlu1 %194 }
  0x8a   : > { %v190_v14 = vpop.permute.xlu0 %189  ;;  %v200_v19 = vpop.permute.xlu1 %199 }
  0x93   : > { %v236_v15 = vpop.f32.mrf.mxu0  ;;  %v239_v16 = vpop.f32.mrf.mxu1 }
  0x94   : > { %v237_v17 = vadd.f32 %v236_v15, %v185_v12  ;;  %v240_v18 = vadd.f32 %v239_v16, %v190_v14 }
  0x96   : > { %249 = vst.msk [vmem:[%s170_s10] sm:$0xff] %vm248_vm2, %v237_v17 }
  0x97   : > { %250 = vst.msk [vmem:[%s170_s10 + $0x8] sm:$0xff] %vm248_vm2, %v240_v18 }
  0x9a   : > { %v242_v20 = vpop.f32.mrf.mxu2  ;;  %v245_v21 = vpop.f32.mrf.mxu3 }
  0x9b   : > { %v243_v22 = vadd.f32 %v242_v20, %v195_v13  ;;  %v246_v23 = vadd.f32 %v245_v21, %v200_v19 }
  0x9d   : > { %251 = vst.msk [vmem:[%s170_s10 + $0x10] sm:$0xff] %vm248_vm2, %v243_v22 }
  0x9e   : > { %252 = vst.msk [vmem:[%s170_s10 + $0x18] sm:$0xff] %vm248_vm2, %v246_v23 }
  0x9f PF: > { %s13_s12 = sadd.s32 1, %s351_s12  }
  0xa0   : > { %p10_p4 = scmp.ge.s32.totalorder %s13_s12, 4  }
  0xa2   :  { %12 = sbr.rel (!%p10_p4) target bundleno = 1 (0x1), region = 62 }

</bundles_post_ra>
